<compile_context>
chip_gen: v7x
topology: tpu7x:2x2x1
jax: 0.10.0
libtpu: 0.0.40
codegen_flags: <defaults>
</compile_context>

<pallas_src>
import jax
import jax.numpy as jnp
from jax import lax
from jax.experimental import pallas as pl
from jax.experimental.pallas import tpu as pltpu

IN_FEATURES = 300
HIDDEN = 64


def swem_kernel(x_ref, w1_ref, b1_ref, w2_ref, b2_ref, o_ref):
    # x_ref : (TB, 300) f32         w1_ref: (300, 64) bf16
    # b1_ref: (1, 64)   f32         w2_ref: (8, 64)   bf16 (row 0 real, rows 1..7 zero)
    # b2_ref: (1, 1)    f32 (SMEM)  o_ref : (1, TB)   f32 (lane-dense)
    x_bf = x_ref[...].astype(jnp.bfloat16)                      # in-kernel cast (VPU slack)
    h = jnp.dot(x_bf, w1_ref[...],
                preferred_element_type=jnp.float32)             # (TB, 64)  MXU, f32 acc
    h = jnp.maximum(h + b1_ref[...], 0.0)                       # bias + ReLU on VPU
    # fc2: contract the 64 hidden features with the batch landing on the lane axis.
    ot = lax.dot_general(w2_ref[...], h.astype(jnp.bfloat16),
                         dimension_numbers=(((1,), (1,)), ((), ())),
                         preferred_element_type=jnp.float32)    # (8, TB)
    o_ref[...] = ot[0:1, :] + b2_ref[0, 0]                      # (1, TB) dense store


def _round_up(x, m):
    return (x + m - 1) // m * m


def _has_two_tensorcores():
    # Perf-only heuristic (a wrong guess only changes tiling, never results).
    try:
        kind = jax.devices()[0].device_kind.lower()
        return "v7" in kind
    except Exception:
        return False


def _choose_tiling(B, tile_b, multi_core):
    """Pick (rows_per_tile, num_tiles) with < 8 rows of padding waste per tile."""
    if tile_b is not None:
        tb = max(8, _round_up(min(tile_b, _round_up(B, 8)), 8))
        return tb, pl.cdiv(B, tb)
    # DMA-granularity target, not VMEM capacity (VMEM is never the constraint here).
    target = 8192 if multi_core else 4096
    num_tiles = pl.cdiv(B, target)
    if multi_core:
        # Give both TensorCores work, as long as each tile still moves >~2 MiB of x.
        min_rows = 2048
        if num_tiles == 1 and B >= 2 * min_rows:
            num_tiles = 2
        elif num_tiles > 1 and num_tiles % 2 == 1 and pl.cdiv(B, num_tiles + 1) >= min_rows:
            num_tiles += 1
    tb = max(8, _round_up(pl.cdiv(B, num_tiles), 8))
    return tb, pl.cdiv(B, tb)


def swem_forward(x, w1, b1, w2, b2, *, tile_b=None):
    """SWEM forward: relu(x @ w1 + b1) @ w2 + b2.

    x: (B, 300) f32; w1: (300, 64); b1: (1, 64); w2: (64, 1); b2: (1, 1).
    Returns (B, 1) f32.
    """
    B, K = x.shape
    assert K == IN_FEATURES

    tb, num_tiles = _choose_tiling(B, tile_b, _has_two_tensorcores())

    x = x.astype(jnp.float32)                       # no pad / no extra HBM pass over x
    w1_bf = jnp.reshape(w1, (IN_FEATURES, HIDDEN)).astype(jnp.bfloat16)
    b1_r = jnp.reshape(b1, (1, HIDDEN)).astype(jnp.float32)
    # fc2 weights as row 0 of an (8, 64) bf16 slab -> full sublane tile for the
    # transposed matmul; rows 1..7 are zero and are sliced away in-kernel.
    w2_8 = (jnp.zeros((8, HIDDEN), jnp.float32)
            .at[0].set(jnp.reshape(w2, (HIDDEN,)).astype(jnp.float32))
            .astype(jnp.bfloat16))
    b2_r = jnp.reshape(b2, (1, 1)).astype(jnp.float32)

    bytes_accessed = (x.size * 4 + w1_bf.size * 2 + w2_8.size * 2
                      + b1_r.size * 4 + b2_r.size * 4 + num_tiles * tb * 4)
    flops = 2 * B * IN_FEATURES * HIDDEN + 2 * B * HIDDEN

    # TODO(synk): pipeline_mode=pl.Buffered(3) on the x spec is a 0-5% sweep
    # candidate; default double-buffering kept for portability.
    out = pl.pallas_call(
        swem_kernel,
        out_shape=jax.ShapeDtypeStruct((num_tiles, 1, tb), jnp.float32),
        grid=(num_tiles,),
        in_specs=[
            pl.BlockSpec((tb, IN_FEATURES), lambda i: (i, 0)),      # x tile (streamed)
            pl.BlockSpec((IN_FEATURES, HIDDEN), lambda i: (0, 0)),  # w1 (resident)
            pl.BlockSpec((1, HIDDEN), lambda i: (0, 0)),            # b1 (resident)
            pl.BlockSpec((8, HIDDEN), lambda i: (0, 0)),            # w2 slab (resident)
            pl.BlockSpec(memory_space=pltpu.MemorySpace.SMEM),      # b2 scalar in SMEM
        ],
        out_specs=pl.BlockSpec((None, 1, tb), lambda i: (i, 0, 0)),
        compiler_params=pltpu.CompilerParams(
            dimension_semantics=("parallel",),      # megacore sharding on v7x
            vmem_limit_bytes=48 << 20,              # worst case (tb=8192) uses ~30 MiB
        ),
        cost_estimate=pl.CostEstimate(
            flops=flops, transcendentals=0, bytes_accessed=bytes_accessed),
    )(x, w1_bf, b1_r, w2_8, b2_r)

    # (num_tiles, 1, tb) -> flat batch order; drop rows of the partial last tile.
    return out.reshape(num_tiles * tb, 1)[:B]


def init_params(key):
    """Deterministic init mimicking nn.Linear default U[-1/sqrt(fan_in), 1/sqrt(fan_in)]."""
    k1, k2, k3, k4 = jax.random.split(key, 4)
    bound1 = 1.0 / jnp.sqrt(IN_FEATURES)
    bound2 = 1.0 / jnp.sqrt(HIDDEN)
    # Stored pre-transposed: (in_features, out_features).
    w1 = jax.random.uniform(k1, (IN_FEATURES, HIDDEN), jnp.float32, -bound1, bound1)
    b1 = jax.random.uniform(k2, (1, HIDDEN), jnp.float32, -bound1, bound1)
    w2 = jax.random.uniform(k3, (HIDDEN, 1), jnp.float32, -bound2, bound2)
    b2 = jax.random.uniform(k4, (1, 1), jnp.float32, -bound2, bound2)
    return w1, b1, w2, b2


if __name__ == "__main__":
    key = jax.random.PRNGKey(0)
    kx, kp = jax.random.split(key)
    w1, b1, w2, b2 = init_params(kp)

    def reference(x):
        return jnp.maximum(x @ w1 + b1, 0.0) @ w2 + b2

    # (batch, tile override): cases exercise the single-tile path, a multi-tile
    # grid with a partial last tile, and the default (no override) partial tile.
    for B, tb in ((8, None), (500, 128), (500, None)):
        x = jax.random.normal(jax.random.fold_in(kx, B), (B, IN_FEATURES), jnp.float32)
        out = jax.block_until_ready(swem_forward(x, w1, b1, w2, b2, tile_b=tb))
        ref = reference(x)
        assert out.shape == (B, 1), out.shape
        # fc1/fc2 run with bf16 operands (f32 accumulate), so compare against the
        # pure-f32 reference with a correspondingly looser tolerance.
        err = float(jnp.max(jnp.abs(out - ref)))
        assert jnp.allclose(out, ref, atol=2e-2, rtol=2e-2), f"max abs err {err}"

    print("KERNEL_OK")
</pallas_src>

<mosaic_0001>
module attributes {stable_mosaic.version = 11 : i64} {
  func.func @swem_kernel(%arg0: i32, %arg1: memref<8x300xf32, #tpu.memory_space<vmem>>, %arg2: memref<300x64xbf16, #tpu.memory_space<vmem>>, %arg3: memref<1x64xf32, #tpu.memory_space<vmem>>, %arg4: memref<8x64xbf16, #tpu.memory_space<vmem>>, %arg5: memref<1x1xf32, #tpu.memory_space<smem>>, %arg6: memref<1x1x8xf32, #tpu.memory_space<vmem>>) attributes {dimension_semantics = [#tpu.dimension_semantics<parallel>], iteration_bounds = array<i64: 1>, scalar_prefetch = 0 : i64, scratch_operands = 0 : i64, tpu.core_type = #tpu.core_type<tc>, window_params = [{transform_indices = @transform_0, window_bounds = array<i64: 8, 300>}, {pipeline_mode = #tpu.pipeline_mode<synchronous>, transform_indices = @transform_1, window_bounds = array<i64: 300, 64>}, {pipeline_mode = #tpu.pipeline_mode<synchronous>, transform_indices = @transform_2, window_bounds = array<i64: 1, 64>}, {pipeline_mode = #tpu.pipeline_mode<synchronous>, transform_indices = @transform_3, window_bounds = array<i64: 8, 64>}, {transform_indices = @transform_4, window_bounds = array<i64: 1, 1>}, {transform_indices = @transform_5, window_bounds = array<i64: 1, 1, 8>}]} {
    %c0 = arith.constant 0 : index
    %c0_0 = arith.constant 0 : index
    %0 = vector.load %arg1[%c0, %c0_0] : memref<8x300xf32, #tpu.memory_space<vmem>>, vector<8x300xf32>
    %1 = arith.truncf %0 : vector<8x300xf32> to vector<8x300xbf16>
    %c0_1 = arith.constant 0 : index
    %c0_2 = arith.constant 0 : index
    %2 = vector.load %arg2[%c0_1, %c0_2] : memref<300x64xbf16, #tpu.memory_space<vmem>>, vector<300x64xbf16>
    %cst = arith.constant dense<0.000000e+00> : vector<8x64xf32>
    %3 = tpu.matmul %1, %2, %cst {dimension_numbers = #tpu.dot_dimension_numbers<[1], [0], [0], [1], [0, 0, 1, 1], [], []>} : vector<8x300xbf16>, vector<300x64xbf16>, vector<8x64xf32> -> vector<8x64xf32>
    %c0_3 = arith.constant 0 : index
    %c0_4 = arith.constant 0 : index
    %4 = vector.load %arg3[%c0_3, %c0_4] : memref<1x64xf32, #tpu.memory_space<vmem>>, vector<1x64xf32>
    %5 = vector.broadcast %4 : vector<1x64xf32> to vector<8x64xf32>
    %6 = arith.addf %3, %5 : vector<8x64xf32>
    %cst_5 = arith.constant 0.000000e+00 : f32
    %7 = vector.broadcast %cst_5 : f32 to vector<8x64xf32>
    %8 = arith.maximumf %6, %7 : vector<8x64xf32>
    %c0_6 = arith.constant 0 : index
    %c0_7 = arith.constant 0 : index
    %9 = vector.load %arg4[%c0_6, %c0_7] : memref<8x64xbf16, #tpu.memory_space<vmem>>, vector<8x64xbf16>
    %10 = arith.truncf %8 : vector<8x64xf32> to vector<8x64xbf16>
    %cst_8 = arith.constant dense<0.000000e+00> : vector<8x8xf32>
    %11 = tpu.matmul %9, %10, %cst_8 {dimension_numbers = #tpu.dot_dimension_numbers<[1], [1], [0], [0], [0, 0, 1, 0], [], []>} : vector<8x64xbf16>, vector<8x64xbf16>, vector<8x8xf32> -> vector<8x8xf32>
    %12 = vector.extract_strided_slice %11 {offsets = [0, 0], sizes = [1, 8], strides = [1, 1]} : vector<8x8xf32> to vector<1x8xf32>
    %c0_9 = arith.constant 0 : index
    %c0_10 = arith.constant 0 : index
    %13 = memref.load %arg5[%c0_9, %c0_10] : memref<1x1xf32, #tpu.memory_space<smem>>
    %14 = vector.broadcast %13 : f32 to vector<1x8xf32>
    %15 = arith.addf %12, %14 : vector<1x8xf32>
    %c0_11 = arith.constant 0 : index
    %c0_12 = arith.constant 0 : index
    %c0_13 = arith.constant 0 : index
    %16 = vector.load %arg6[%c0_11, %c0_12, %c0_13] : memref<1x1x8xf32, #tpu.memory_space<vmem>>, vector<1x1x8xf32>
    %17 = vector.shape_cast %16 : vector<1x1x8xf32> to vector<1x8xf32>
    %18 = vector.shape_cast %15 : vector<1x8xf32> to vector<1x1x8xf32>
    tpu.vector_store %arg6[%c0_11, %c0_12, %c0_13], %18 {strides = array<i32>} : memref<1x1x8xf32, #tpu.memory_space<vmem>>, vector<1x1x8xf32>,
    return
  }
  func.func @transform_0(%arg0: i32) -> (i32, i32) {
    %c0_i32 = arith.constant 0 : i32
    %c0_i32_0 = arith.constant 0 : i32
    return %arg0, %c0_i32 : i32, i32
  }
  func.func @transform_1(%arg0: i32) -> (i32, i32) {
    %c0_i32 = arith.constant 0 : i32
    %c0_i32_0 = arith.constant 0 : i32
    %c0_i32_1 = arith.constant 0 : i32
    return %c0_i32, %c0_i32_0 : i32, i32
  }
  func.func @transform_2(%arg0: i32) -> (i32, i32) {
    %c0_i32 = arith.constant 0 : i32
    %c0_i32_0 = arith.constant 0 : i32
    %c0_i32_1 = arith.constant 0 : i32
    return %c0_i32, %c0_i32_0 : i32, i32
  }
  func.func @transform_3(%arg0: i32) -> (i32, i32) {
    %c0_i32 = arith.constant 0 : i32
    %c0_i32_0 = arith.constant 0 : i32
    %c0_i32_1 = arith.constant 0 : i32
    return %c0_i32, %c0_i32_0 : i32, i32
  }
  func.func @transform_4(%arg0: i32) -> (i32, i32) {
    %c0_i32 = arith.constant 0 : i32
    %c0_i32_0 = arith.constant 0 : i32
    %c0_i32_1 = arith.constant 0 : i32
    return %c0_i32, %c0_i32_0 : i32, i32
  }
  func.func @transform_5(%arg0: i32) -> (i32, i32, i32) {
    %c0_i32 = arith.constant 0 : i32
    %c0_i32_0 = arith.constant 0 : i32
    %c0_i32_1 = arith.constant 0 : i32
    return %arg0, %c0_i32, %c0_i32_0 : i32, i32, i32
  }
}

</mosaic_0001>

<bundles_post_ra>
// kernel: tpu_custom_call.1
= control target key start
LH: loop header
LB: loop body
LE: loop exit
PB: predicated region body
PF: predicated region fallthrough
CT: control target
= control target key end

     0   :  { %v456_v2 = vmov 0.0   ;;  %vm457_vm0 = vmmov 0   ;;  %vm191_vm1 = vcmask 1045504   ;;  %s578_s0 = inlined_call_operand.vmem [shape: f32[8,300], index: 0, kind: input, shape index: {}]   ;;  %s579_s1 = inlined_call_operand.vmem [shape: bf16[300,64], index: 1, kind: input, shape index: {}]   ;;  %s580_s2 = inlined_call_operand.vmem [shape: f32[1,64], index: 2, kind: input, shape index: {}]   ;;  %s581_s3 = inlined_call_operand.vmem [shape: bf16[8,64], index: 3, kind: input, shape index: {}]   ;;  %s582_s4 = inlined_call_operand.<no memory space> [shape: f32[1,1], index: 4, kind: input, shape index: {}]   ;;  %s583_s5 = inlined_call_operand.hbm [shape: f32[1,1,8], index: 5, kind: output, shape index: {}]  }
   0x1   :  { %v413_v0 = vld [vmem:[%s579_s1 + $0x40] sm:$0xff]   ;;  %394 = vmatprep.subr.bf16.mxu1 %v456_v2  ;;  %v415_v3 = vld [vmem:[%s579_s1 + $0x48] sm:$0xff]   ;;  %400 = vmatprep.mubr.msk.bf16.mxu1 %vm457_vm0, %v456_v2  ;;  %v417_v5 = vld [vmem:[%s579_s1 + $0x50] sm:$0xff]  }
   0x2   :  { %v414_v1 = vld [vmem:[%s579_s1] sm:$0xff]   ;;  %366 = vmatprep.subr.bf16.mxu0 %v413_v0  ;;  %v416_v4 = vld [vmem:[%s579_s1 + $0x8] sm:$0xff]   ;;  %v418_v6 = vld [vmem:[%s579_s1 + $0x10] sm:$0xff]  }
   0x3   :  { %367 = vmatpush3.bf16.msra.mxu0 %v414_v1  ;;  %v419_v7 = vld [vmem:[%s579_s1 + $0x58] sm:$0xff]   ;;  %v421_v9 = vld [vmem:[%s579_s1 + $0x60] sm:$0xff]   ;;  %v428_v12 = vld [vmem:[%s579_s1 + $0x88] sm:$0xff]  }
   0x4   :  { %368 = vmatprep.subr.bf16.mxu0 %v415_v3  ;;  %v420_v8 = vld [vmem:[%s579_s1 + $0x18] sm:$0xff]   ;;  %v425_v10 = vld [vmem:[%s579_s1 + $0x80] sm:$0xff]   ;;  %v423_v13 = vld [vmem:[%s579_s1 + $0x68] sm:$0xff]  }
   0x5   :  { %v422_v11 = vld [vmem:[%s579_s1 + $0x20] sm:$0xff]   ;;  %395 = vmatpush3.bf16.msra.mxu1 %v425_v10  ;;  %v24_v14 = vld [vmem:[%s578_s0 + $0x8] sm:$0xff]  ;;  %v431_v17 = vld [vmem:[%s579_s1 + $0x90] sm:$0x3f]  }
   0x6   :  { %396 = vmatprep.subr.bf16.mxu1 %v456_v2  ;;  %v424_v15 = vld [vmem:[%s579_s1 + $0x28] sm:$0xff]   ;;  %v27_v16 = vpack.c.bf16 %v24_v14, %v24_v14  ;;  %v25_v18 = vld [vmem:[%s578_s0 + $0x10] sm:$0xff] }
   0x7   :  { %369 = vmatpush3.bf16.msra.mxu0 %v416_v4  ;;  %v426_v19 = vld [vmem:[%s579_s1 + $0x70] sm:$0xff]  }
   0x8   :  { %370 = vmatprep.subr.bf16.mxu0 %v417_v5 }
   0x9   :  { %397 = vmatpush3.bf16.msra.mxu1 %v428_v12 }
   0xa   :  { %398 = vmatprep.subr.bf16.mxu1 %v456_v2 }
   0xb   :  { %371 = vmatpush3.bf16.msra.mxu0 %v418_v6 }
   0xc   :  { %372 = vmatprep.subr.bf16.mxu0 %v419_v7 }
   0xf   :  { %373 = vmatpush3.bf16.msra.mxu0 %v420_v8 }
  0x10   :  { %374 = vmatprep.subr.bf16.mxu0 %v421_v9 }
  0x13   :  { %375 = vmatpush3.bf16.msra.mxu0 %v422_v11 }
  0x14   :  { %376 = vmatprep.subr.bf16.mxu0 %v423_v13 }
  0x15   :  { %11 = vsyncpa [#allocation4], 0  ;;  %227 = vmatprep.mubr.bf16.mxu0 %v27_v16  ;;  %v193_v20 = vsel %vm191_vm1, %v431_v17, 0  ;;  %v28_v21 = vpack.c.bf16 %v25_v18, %v25_v18  ;;  %vm187_vm2 = vcmask 359424   ;;  %v427_v22 = vld [vmem:[%s579_s1 + $0x30] sm:$0xff]   ;;  %v429_v23 = vld [vmem:[%s579_s1 + $0x78] sm:$0xff]   ;;  %v326_v43 = vstv %s582_s4 }
  0x16   :  { %399 = vmatpush3.bf16.msra.mxu1 %v193_v20  ;;  %v430_v24 = vld [vmem:[%s579_s1 + $0x38] sm:$0xff]   ;;  %v23_v25 = vld [vmem:[%s578_s0] sm:$0xff]  ;;  %vm278_vm3 = vcmask 523264   ;;  %vm328_vm4 = vcmask 57344  }
  0x17   :  { %377 = vmatpush3.bf16.msra.mxu0 %v424_v15  ;;  %404 = vmatprep.subr.bf16.mxu1 %v456_v2  ;;  %v26_v26 = vpack.c.bf16 %v23_v25, %v23_v25  ;;  %v344_v33 = vld [vmem:[%s580_s2] ss:$0 sm:$0xff]  ;;  %s458_s2 = smov [#allocation3]  }
  0x18   :  { %378 = vmatprep.subr.bf16.mxu0 %v426_v19  ;;  %v276_v42 = vld [vmem:[%s581_s3] sm:$0xf]  ;;  %s336_s16 = sshll.u32 %s458_s2, 4  ;;  %s337_s16 = int_to_ptr.vmem [resolvable:$true] %s336_s16 }
  0x19   :  { %401 = vmatmul.mubr.msk.bf16.vlgmr.msra.gmra.mrb[0].mxu1 %vm187_vm2, %v28_v21  ;;  %s432_s17 = scalar_lea.vmem %s337_s16, 16  ;;  %s436_s18 = scalar_lea.vmem %s337_s16, 32 }
  0x1a   :  { %406 = vmatprep.mubr.msk.bf16.mxu1 %vm457_vm0, %v456_v2  ;;  %p433_p0 = scmp.ne.s32.totalorder %s337_s16, %s432_s17  ;;  %p437_p1 = scmp.lt.s32.totalorder %s337_s16, %s337_s16 }
  0x1b   :  { %379 = vmatpush3.bf16.msra.mxu0 %v427_v22  ;;  %p438_p2 = scmp.lt.s32.totalorder %s436_s18, %s432_s17 }
  0x1c   :  { %380 = vmatprep.subr.bf16.mxu0 %v429_v23 }
  0x1d   :  { %p439_p3 = por %p438_p2, %p437_p1 }
  0x1f   :  { %381 = vmatpush3.bf16.msra.mxu0 %v430_v24  ;;  %p440_p4 = pnand %p439_p3, %p433_p0 }
  0x22   :  { %228 = vmatmul.mubr.bf16.vlgmr.msra.gmra.mrb[0].mxu0 %v26_v26 }
  0xec   :  { %v269_v27 = vpop.f32.mrb[0].mxu1 }
  0xed   :  { %v402_v28 = vpop.f32.mrb[1].mxu1 }
  0xee   :  { %v272_v29 = vpop.f32.mrb[2].mxu1 }
  0xef   :  { %v403_v30 = vpop.f32.mrb[3].mxu1 }
  0xf5   :  { %v382_v31 = vpop.f32.mrb[0].mxu0 }
  0xf6   :  { %v383_v32 = vpop.f32.mrb[1].mxu0 }
  0xf7   :  { %v384_v34 = vadd.f32 %v383_v32, %v382_v31  ;;  %v385_v35 = vpop.f32.mrb[2].mxu0 }
  0xf8   :  { %v386_v36 = vpop.f32.mrb[3].mxu0 }
  0xf9   :  { %v230_v37 = vadd.f32 %v384_v34, %v344_v33 }
  0xfb   :  { %v270_v38 = vadd.f32 %v269_v27, %v230_v37 }
  0xfd   :  { %v275_v39 = vmax.f32 %v270_v38, 0.0 }
  0xff   :  { %v277_v40 = vpack.c.bf16 %v275_v39, %v275_v39 }
 0x101   :  { %v283_v41 = vsel %vm278_vm3, %v277_v40, 0 }
 0x102   :  { %405 = vmatpush3.bf16.xpose.msra.mxu1 %v283_v41 }
 0x109   :  { %407 = vmatmul.mubr.msk.bf16.vlgmr.msra.gmra.mrb[4].mxu1 %vm278_vm3, %v276_v42 }
 0x1dc   :  { %v319_v44 = vpop.f32.mrb[4].mxu1 }
 0x1dd   :  { %v327_v45 = vadd.f32 %v326_v43, %v319_v44  ;;  %v408_v46 = vpop.f32.mrb[5].mxu1 }
 0x1de   :  { %v322_v47 = vpop.f32.mrb[6].mxu1 }
 0x1df   :  { %v409_v48 = vpop.f32.mrb[7].mxu1  ;;  %329 = vst.msk [vmem:[#allocation3] sm:$0x1] %vm328_vm4, %v327_v45 }
 0x1e0   :  { %443 = shalt.err (!%p440_p4)
}
 0x1e1   :  { %s444_s19 = scalar_lea.hbm %s583_s5, 16 }
 0x1e2   :  { %p445_p5 = scmp.ne.s32.totalorder %s583_s5, %s444_s19  ;;  %p448_p6 = scmp.lt.u32.totalorder %s444_s19, %s583_s5 }
 0x1e4   :  { %p450_p7 = pnand %p448_p6, %p445_p5 }
 0x1e6   :  { %453 = shalt.err (!%p450_p7)
}
 0x1e7   :  { %339 = dma.vmem_to_hbm [thread:$0]  %s337_s16, 16, %s583_s5, [#allocation4]  }
 0x1e8   :  { %454 = dma.done.wait [#allocation4], 16  }
 0x1e9   :  { %455 = vsyncadd [#allocation4], 4294967280 }
 0x1ea   :  { %343 = vsyncpa [#allocation4], 1 }

</bundles_post_ra>
